<compile_context>
chip_gen: v6e
topology: v6e:2x2x1
jax: 0.10.0
libtpu: 0.0.40
codegen_flags: <defaults>
</compile_context>

<pallas_src>
import functools

import jax
import jax.numpy as jnp
from jax import lax
from jax.experimental import pallas as pl
from jax.experimental.pallas import tpu as pltpu

LANE = 128
_BLOCK_ROWS = 2048                 # 2048 x 128 f32 = 1 MiB streaming block
_FUSE_LIMIT = _BLOCK_ROWS * LANE   # <= one block -> single fused kernel call


# ---------------------------------------------------------------------------
# Shared qparam math (MinMaxObserver.calculate_qparams, affine, [0, 255])
# Pure jnp: used both inside kernels (on (1,1) tiles) and host-side (scalars).
# ---------------------------------------------------------------------------
def _qparams(min_val, max_val, quant_min, quant_max):
    qmin = jnp.float32(quant_min)
    qmax = jnp.float32(quant_max)
    min_val = jnp.minimum(min_val, 0.0)
    max_val = jnp.maximum(max_val, 0.0)
    eps = jnp.float32(jnp.finfo(jnp.float32).eps)
    same = max_val == min_val
    scale = jnp.where(same, jnp.float32(1.0),
                      jnp.maximum((max_val - min_val) / (qmax - qmin), eps))
    zp = jnp.where(same, jnp.float32(0.0),
                   jnp.clip(qmin - jnp.round(min_val / scale), qmin, qmax))
    return scale, zp


# ---------------------------------------------------------------------------
# Fused path (small tensors): observer + qparams + fake-quant in ONE kernel
# ---------------------------------------------------------------------------
def _fused_kernel(prev_ref, x_ref, o_ref, mm_ref, *, quant_min, quant_max):
    qmin = jnp.float32(quant_min)
    qmax = jnp.float32(quant_max)

    xf = x_ref[...].astype(jnp.float32)              # cast in-kernel (VPU, free)

    # Observer: (R,128) -> (8,128) with VPU-only elementwise mins across vregs,
    # then one small XLU reduce to (1,1).
    xr = xf.reshape(-1, 8, LANE)
    mn = jnp.min(jnp.min(xr, axis=0), axis=(0, 1), keepdims=True)   # (1,1)
    mx = jnp.max(jnp.max(xr, axis=0), axis=(0, 1), keepdims=True)   # (1,1)

    # Merge with the running MinMaxObserver state (prev_ref = [run_min, run_max]).
    mn = jnp.minimum(mn, prev_ref[0])
    mx = jnp.maximum(mx, prev_ref[1])
    mm_ref[0:1, :] = mn                               # single tiny (2,1) output
    mm_ref[1:2, :] = mx

    scale, zp = _qparams(mn, mx, quant_min, quant_max)
    inv_scale = jnp.float32(1.0) / scale              # hoisted, not per element
    # TODO(synk): torch divides by scale (as double); x * (1/scale) can differ by
    # 1 ulp for values exactly on a quantization-bin boundary.
    q = jnp.clip(jnp.round(xf * inv_scale + zp), qmin, qmax)
    o_ref[...] = ((q - zp) * scale).astype(o_ref.dtype)


def _fused_call(x2d, prev_mm, quant_min, quant_max):
    rows = x2d.shape[0]
    kernel = functools.partial(_fused_kernel, quant_min=quant_min, quant_max=quant_max)
    out2d, mm = pl.pallas_call(
        kernel,
        out_shape=(jax.ShapeDtypeStruct((rows, LANE), x2d.dtype),
                   jax.ShapeDtypeStruct((2, 1), jnp.float32)),
        grid_spec=pltpu.PrefetchScalarGridSpec(
            num_scalar_prefetch=0,
            grid=(1,),
            in_specs=[
                pl.BlockSpec(memory_space=pltpu.MemorySpace.SMEM),  # (2,) running min/max
                pl.BlockSpec((rows, LANE), lambda i: (0, 0)),
            ],
            out_specs=(
                pl.BlockSpec((rows, LANE), lambda i: (0, 0)),
                pl.BlockSpec((2, 1), lambda i: (0, 0)),
            ),
        ),
        compiler_params=pltpu.CompilerParams(dimension_semantics=("arbitrary",)),
    )(prev_mm, x2d)
    return out2d, mm


# ---------------------------------------------------------------------------
# Tiled path (large tensors): observer kernel + fake-quant kernel
# ---------------------------------------------------------------------------
def _minmax_kernel(x_ref, pmin_ref, pmax_ref, *, rows, block_rows):
    """(8,128) partial min/max, accumulated in the resident VMEM output block."""
    i = pl.program_id(0)

    @pl.when(i == 0)
    def _init():
        pmin_ref[...] = jnp.full(pmin_ref.shape, jnp.inf, jnp.float32)
        pmax_ref[...] = jnp.full(pmax_ref.shape, -jnp.inf, jnp.float32)

    xf = x_ref[...].astype(jnp.float32)
    if rows % block_rows != 0:
        # Ragged last block: rows past the array end hold unspecified data -> mask
        # them with +/-inf (cheap VPU selects, hidden under the block DMA).
        gid = lax.broadcasted_iota(jnp.int32, (block_rows, 1), 0) + i * block_rows
        valid = gid < rows
        x_for_min = jnp.where(valid, xf, jnp.inf)
        x_for_max = jnp.where(valid, xf, -jnp.inf)
    else:
        x_for_min = xf
        x_for_max = xf

    pmin_ref[...] = jnp.minimum(pmin_ref[...],
                                jnp.min(x_for_min.reshape(-1, 8, LANE), axis=0))
    pmax_ref[...] = jnp.maximum(pmax_ref[...],
                                jnp.max(x_for_max.reshape(-1, 8, LANE), axis=0))


def _minmax_call(x2d):
    rows = x2d.shape[0]
    nblk = pl.cdiv(rows, _BLOCK_ROWS)
    kernel = functools.partial(_minmax_kernel, rows=rows, block_rows=_BLOCK_ROWS)
    part_spec = pl.BlockSpec((8, LANE), lambda i: (0, 0))
    return pl.pallas_call(
        kernel,
        out_shape=(jax.ShapeDtypeStruct((8, LANE), jnp.float32),
                   jax.ShapeDtypeStruct((8, LANE), jnp.float32)),
        grid_spec=pltpu.PrefetchScalarGridSpec(
            num_scalar_prefetch=0,
            grid=(nblk,),
            in_specs=[pl.BlockSpec((_BLOCK_ROWS, LANE), lambda i: (i, 0))],
            out_specs=(part_spec, part_spec),
        ),
        compiler_params=pltpu.CompilerParams(dimension_semantics=("arbitrary",)),
    )(x2d)


def _fq_kernel(prev_ref, pmin_ref, pmax_ref, x_ref, o_ref, *, quant_min, quant_max):
    qmin = jnp.float32(quant_min)
    qmax = jnp.float32(quant_max)

    # Recompute qparams per block from the (8,128) partials + running state:
    # ~40 VPU/XLU ops, fully hidden under the 1 MiB block DMA -> no tiny XLA glue
    # ops sitting serially between the two pallas_calls.
    mn = jnp.minimum(jnp.min(pmin_ref[...], axis=(0, 1), keepdims=True), prev_ref[0])
    mx = jnp.maximum(jnp.max(pmax_ref[...], axis=(0, 1), keepdims=True), prev_ref[1])
    scale, zp = _qparams(mn, mx, quant_min, quant_max)
    inv_scale = jnp.float32(1.0) / scale

    xf = x_ref[...].astype(jnp.float32)
    q = jnp.clip(jnp.round(xf * inv_scale + zp), qmin, qmax)
    o_ref[...] = ((q - zp) * scale).astype(o_ref.dtype)


def _fq_call(x2d, prev_mm, pmin, pmax, quant_min, quant_max):
    rows = x2d.shape[0]
    nblk = pl.cdiv(rows, _BLOCK_ROWS)
    kernel = functools.partial(_fq_kernel, quant_min=quant_min, quant_max=quant_max)
    small = pl.BlockSpec((8, LANE), lambda i: (0, 0))
    return pl.pallas_call(
        kernel,
        out_shape=jax.ShapeDtypeStruct((rows, LANE), x2d.dtype),
        grid_spec=pltpu.PrefetchScalarGridSpec(
            num_scalar_prefetch=0,
            grid=(nblk,),
            in_specs=[
                pl.BlockSpec(memory_space=pltpu.MemorySpace.SMEM),  # (2,) running min/max
                small,                                              # pmin (8,128)
                small,                                              # pmax (8,128)
                pl.BlockSpec((_BLOCK_ROWS, LANE), lambda i: (i, 0)),
            ],
            out_specs=pl.BlockSpec((_BLOCK_ROWS, LANE), lambda i: (i, 0)),
        ),
        compiler_params=pltpu.CompilerParams(dimension_semantics=("parallel",)),
    )(prev_mm, pmin, pmax, x2d)


# ---------------------------------------------------------------------------
# Forward dispatcher
# ---------------------------------------------------------------------------
def _fake_quantize_forward(x, prev_mm, quant_min, quant_max):
    orig_shape = x.shape
    n = x.size
    flat = x.reshape(-1)

    itemsize = jnp.dtype(x.dtype).itemsize
    granule_rows = max(8, 32 // max(1, itemsize))   # f32: 8, bf16: 16, int8: 32
    fused = n <= _FUSE_LIMIT

    # Fused path needs rows % 8 == 0 (in-kernel (-1,8,128) regroup) and benefits
    # from native sublane packing; tiled path only needs numel % 128 == 0 for the
    # host-side reshape (ragged blocks handled in-kernel).  Any pad is zeros and
    # qparam-neutral (calculate_qparams clamps min<=0, max>=0).
    align = granule_rows * LANE if fused else LANE
    pad = (-n) % align
    if pad:
        flat = jnp.pad(flat, (0, pad))
    x2d = flat.reshape(-1, LANE)

    if fused:
        out2d, mm = _fused_call(x2d, prev_mm, quant_min, quant_max)
        new_mm = mm.reshape(2)
        scale, zp = _qparams(mm[0, 0], mm[1, 0], quant_min, quant_max)
    else:
        pmin, pmax = _minmax_call(x2d)
        out2d = _fq_call(x2d, prev_mm, pmin, pmax, quant_min, quant_max)
        # Tiny off-critical-path ops (module attributes / running state only; the
        # fq kernel above does not depend on these values).
        mn = jnp.minimum(jnp.min(pmin), prev_mm[0])
        mx = jnp.maximum(jnp.max(pmax), prev_mm[1])
        new_mm = jnp.stack([mn, mx])
        scale, zp = _qparams(mn, mx, quant_min, quant_max)

    out_flat = out2d.reshape(-1)
    if pad:
        out_flat = out_flat[:n]
    return out_flat.reshape(orig_shape), scale, zp, new_mm


class FakeQuantize:
    """JAX/Pallas equivalent of torch.quantization.FakeQuantize forward
    (quint8, per_tensor_affine, quant_min=0, quant_max=255, MinMaxObserver)."""

    def __init__(self, quant_min=0, quant_max=255):
        assert 0 <= quant_min, "quant_min out of bound"
        assert quant_min <= quant_max, "quant_min must be <= quant_max"
        assert quant_max <= 255, "quant_max out of bound"
        self.quant_min = quant_min
        self.quant_max = quant_max
        self.enabled = True
        self.scale = None
        self.zero_point = None
        # Running MinMaxObserver state, accumulated across forward calls.
        self._running_minmax = jnp.array([jnp.inf, -jnp.inf], dtype=jnp.float32)

    def enable(self, enabled=True):
        self.enabled = enabled
        return self

    def disable(self):
        return self.enable(False)

    def calculate_qparams(self):
        return _qparams(self._running_minmax[0], self._running_minmax[1],
                        self.quant_min, self.quant_max)

    def __call__(self, x):
        if not self.enabled:
            return x
        out, scale, zp, new_mm = _fake_quantize_forward(
            x, self._running_minmax, self.quant_min, self.quant_max)
        self._running_minmax = new_mm
        self.scale = scale
        self.zero_point = zp.astype(jnp.int32)
        return out


# ---------------------------------------------------------------------------
# Pure-JAX reference (same math) for a sanity check
# ---------------------------------------------------------------------------
def _reference(x, quant_min=0, quant_max=255):
    xf = x.astype(jnp.float32)
    mn = jnp.min(xf)
    mx = jnp.max(xf)
    scale, zp = _qparams(mn, mx, quant_min, quant_max)
    inv_scale = jnp.float32(1.0) / scale
    q = jnp.clip(jnp.round(xf * inv_scale + zp), quant_min, quant_max)
    return ((q - zp) * scale).astype(x.dtype)


if __name__ == "__main__":
    key = jax.random.PRNGKey(0)
    k1, k2 = jax.random.split(key)

    # Small NCHW activation -> fused single-call path.
    x_small = jax.random.normal(k1, (2, 4, 16, 16), dtype=jnp.float32) * 3.0 + 0.5
    fq = FakeQuantize(quant_min=0, quant_max=255)
    out_small = jax.block_until_ready(fq(x_small))
    ref_small = _reference(x_small)
    assert out_small.shape == x_small.shape and out_small.dtype == x_small.dtype
    assert jnp.allclose(out_small, ref_small, atol=1e-5, rtol=1e-5), "fused path mismatch"

    # Larger activation -> tiled two-kernel path (also exercises the ragged last
    # block: 2560 rows with 2048-row blocks, no pad/unpad copies).
    x_big = jax.random.normal(k2, (5, 8, 64, 128), dtype=jnp.float32) * 2.0 - 0.25
    fq2 = FakeQuantize(quant_min=0, quant_max=255)
    out_big = jax.block_until_ready(fq2(x_big))
    ref_big = _reference(x_big)
    assert out_big.shape == x_big.shape and out_big.dtype == x_big.dtype
    assert jnp.allclose(out_big, ref_big, atol=1e-5, rtol=1e-5), "tiled path mismatch"

    print("KERNEL_OK")
</pallas_src>

<mosaic_0001>
module attributes {stable_mosaic.version = 11 : i64} {
  func.func @_fused_kernel(%arg0: i32, %arg1: memref<2xf32, #tpu.memory_space<smem>>, %arg2: memref<16x128xf32, #tpu.memory_space<vmem>>, %arg3: memref<16x128xf32, #tpu.memory_space<vmem>>, %arg4: memref<2x1xf32, #tpu.memory_space<vmem>>) attributes {dimension_semantics = [#tpu.dimension_semantics<arbitrary>], iteration_bounds = array<i64: 1>, scalar_prefetch = 0 : i64, scratch_operands = 0 : i64, tpu.core_type = #tpu.core_type<tc>, window_params = [{transform_indices = @transform_0, window_bounds = array<i64: 2>}, {pipeline_mode = #tpu.pipeline_mode<synchronous>, transform_indices = @transform_1, window_bounds = array<i64: 16, 128>}, {pipeline_mode = #tpu.pipeline_mode<synchronous>, transform_indices = @transform_2, window_bounds = array<i64: 16, 128>}, {pipeline_mode = #tpu.pipeline_mode<synchronous>, transform_indices = @transform_3, window_bounds = array<i64: 2, 1>}]} {
    %c0 = arith.constant 0 : index
    %c0_0 = arith.constant 0 : index
    %0 = vector.load %arg2[%c0, %c0_0] : memref<16x128xf32, #tpu.memory_space<vmem>>, vector<16x128xf32>
    %1 = vector.shape_cast %0 : vector<16x128xf32> to vector<2x8x128xf32>
    %cst = arith.constant dense<0x7F800000> : vector<8x128xf32>
    %2 = vector.multi_reduction <minimumf>, %1, %cst [0] : vector<2x8x128xf32> to vector<8x128xf32>
    %3 = vector.shape_cast %2 : vector<8x128xf32> to vector<1x8x128xf32>
    %cst_1 = arith.constant dense<0x7F800000> : vector<1xf32>
    %4 = vector.multi_reduction <minimumf>, %3, %cst_1 [1, 2] : vector<1x8x128xf32> to vector<1xf32>
    %5 = vector.shape_cast %4 : vector<1xf32> to vector<1x1x1xf32>
    %6 = vector.extract %5[0, 0, 0] : f32 from vector<1x1x1xf32>
    %7 = vector.broadcast %6 : f32 to vector<1x1xf32>
    %cst_2 = arith.constant dense<0xFF800000> : vector<8x128xf32>
    %8 = vector.multi_reduction <maximumf>, %1, %cst_2 [0] : vector<2x8x128xf32> to vector<8x128xf32>
    %9 = vector.shape_cast %8 : vector<8x128xf32> to vector<1x8x128xf32>
    %cst_3 = arith.constant dense<0xFF800000> : vector<1xf32>
    %10 = vector.multi_reduction <maximumf>, %9, %cst_3 [1, 2] : vector<1x8x128xf32> to vector<1xf32>
    %11 = vector.shape_cast %10 : vector<1xf32> to vector<1x1x1xf32>
    %12 = vector.extract %11[0, 0, 0] : f32 from vector<1x1x1xf32>
    %13 = vector.broadcast %12 : f32 to vector<1x1xf32>
    %c0_4 = arith.constant 0 : index
    %14 = memref.load %arg1[%c0_4] : memref<2xf32, #tpu.memory_space<smem>>
    %15 = vector.broadcast %14 : f32 to vector<1x1xf32>
    %16 = arith.minimumf %7, %15 : vector<1x1xf32>
    %c1 = arith.constant 1 : index
    %17 = memref.load %arg1[%c1] : memref<2xf32, #tpu.memory_space<smem>>
    %18 = vector.broadcast %17 : f32 to vector<1x1xf32>
    %19 = arith.maximumf %13, %18 : vector<1x1xf32>
    %c0_5 = arith.constant 0 : index
    %c0_6 = arith.constant 0 : index
    %20 = vector.load %arg4[%c0_5, %c0_6] : memref<2x1xf32, #tpu.memory_space<vmem>>, vector<1x1xf32>
    tpu.vector_store %arg4[%c0_5, %c0_6], %16 {strides = array<i32>} : memref<2x1xf32, #tpu.memory_space<vmem>>, vector<1x1xf32>,
    %c1_7 = arith.constant 1 : index
    %c0_8 = arith.constant 0 : index
    %21 = vector.load %arg4[%c1_7, %c0_8] : memref<2x1xf32, #tpu.memory_space<vmem>>, vector<1x1xf32>
    tpu.vector_store %arg4[%c1_7, %c0_8], %19 {strides = array<i32>} : memref<2x1xf32, #tpu.memory_space<vmem>>, vector<1x1xf32>,
    %cst_9 = arith.constant 0.000000e+00 : f32
    %22 = vector.broadcast %cst_9 : f32 to vector<1x1xf32>
    %23 = arith.minimumf %16, %22 : vector<1x1xf32>
    %cst_10 = arith.constant 0.000000e+00 : f32
    %24 = vector.broadcast %cst_10 : f32 to vector<1x1xf32>
    %25 = arith.maximumf %19, %24 : vector<1x1xf32>
    %26 = arith.cmpf oeq, %25, %23 : vector<1x1xf32>
    %27 = arith.subf %25, %23 : vector<1x1xf32>
    %cst_11 = arith.constant 2.550000e+02 : f32
    %cst_12 = arith.constant 0.000000e+00 : f32
    %28 = arith.subf %cst_11, %cst_12 : f32
    %29 = vector.broadcast %28 : f32 to vector<1x1xf32>
    %30 = arith.divf %27, %29 : vector<1x1xf32>
    %cst_13 = arith.constant 1.1920929E-7 : f32
    %31 = vector.broadcast %cst_13 : f32 to vector<1x1xf32>
    %32 = arith.maximumf %30, %31 : vector<1x1xf32>
    %cst_14 = arith.constant 1.000000e+00 : f32
    %33 = vector.broadcast %cst_14 : f32 to vector<1x1xf32>
    %34 = arith.select %26, %33, %32 : vector<1x1xi1>, vector<1x1xf32>
    %35 = arith.divf %23, %34 : vector<1x1xf32>
    %36 = math.roundeven %35 : vector<1x1xf32>
    %cst_15 = arith.constant 0.000000e+00 : f32
    %37 = vector.broadcast %cst_15 : f32 to vector<1x1xf32>
    %38 = arith.subf %37, %36 : vector<1x1xf32>
    %cst_16 = arith.constant 0.000000e+00 : f32
    %cst_17 = arith.constant 2.550000e+02 : f32
    %39 = vector.broadcast %cst_16 : f32 to vector<1x1xf32>
    %40 = arith.maximumf %39, %38 : vector<1x1xf32>
    %41 = vector.broadcast %cst_17 : f32 to vector<1x1xf32>
    %42 = arith.minimumf %41, %40 : vector<1x1xf32>
    %cst_18 = arith.constant 0.000000e+00 : f32
    %43 = vector.broadcast %cst_18 : f32 to vector<1x1xf32>
    %44 = arith.select %26, %43, %42 : vector<1x1xi1>, vector<1x1xf32>
    %cst_19 = arith.constant 1.000000e+00 : f32
    %45 = vector.broadcast %cst_19 : f32 to vector<1x1xf32>
    %46 = arith.divf %45, %34 : vector<1x1xf32>
    %47 = vector.broadcast %46 : vector<1x1xf32> to vector<16x128xf32>
    %48 = arith.mulf %0, %47 : vector<16x128xf32>
    %49 = vector.broadcast %44 : vector<1x1xf32> to vector<16x128xf32>
    %50 = arith.addf %48, %49 : vector<16x128xf32>
    %51 = math.roundeven %50 : vector<16x128xf32>
    %cst_20 = arith.constant 0.000000e+00 : f32
    %cst_21 = arith.constant 2.550000e+02 : f32
    %52 = vector.broadcast %cst_20 : f32 to vector<16x128xf32>
    %53 = arith.maximumf %52, %51 : vector<16x128xf32>
    %54 = vector.broadcast %cst_21 : f32 to vector<16x128xf32>
    %55 = arith.minimumf %54, %53 : vector<16x128xf32>
    %56 = vector.broadcast %44 : vector<1x1xf32> to vector<16x128xf32>
    %57 = arith.subf %55, %56 : vector<16x128xf32>
    %58 = vector.broadcast %34 : vector<1x1xf32> to vector<16x128xf32>
    %59 = arith.mulf %57, %58 : vector<16x128xf32>
    %c0_22 = arith.constant 0 : index
    %c0_23 = arith.constant 0 : index
    %60 = vector.load %arg3[%c0_22, %c0_23] : memref<16x128xf32, #tpu.memory_space<vmem>>, vector<16x128xf32>
    tpu.vector_store %arg3[%c0_22, %c0_23], %59 {strides = array<i32>} : memref<16x128xf32, #tpu.memory_space<vmem>>, vector<16x128xf32>,
    return
  }
  func.func @transform_0(%arg0: i32) -> i32 {
    %c0_i32 = arith.constant 0 : i32
    %c0_i32_0 = arith.constant 0 : i32
    return %c0_i32 : i32
  }
  func.func @transform_1(%arg0: i32) -> (i32, i32) {
    %c0_i32 = arith.constant 0 : i32
    %c0_i32_0 = arith.constant 0 : i32
    %c0_i32_1 = arith.constant 0 : i32
    return %c0_i32, %c0_i32_0 : i32, i32
  }
  func.func @transform_2(%arg0: i32) -> (i32, i32) {
    %c0_i32 = arith.constant 0 : i32
    %c0_i32_0 = arith.constant 0 : i32
    %c0_i32_1 = arith.constant 0 : i32
    return %c0_i32, %c0_i32_0 : i32, i32
  }
  func.func @transform_3(%arg0: i32) -> (i32, i32) {
    %c0_i32 = arith.constant 0 : i32
    %c0_i32_0 = arith.constant 0 : i32
    %c0_i32_1 = arith.constant 0 : i32
    return %c0_i32, %c0_i32_0 : i32, i32
  }
}

</mosaic_0001>

<bundles_post_ra>
// kernel: tpu_custom_call.1
= control target key start
LH: loop header
LB: loop body
LE: loop exit
PB: predicated region body
PF: predicated region fallthrough
CT: control target
= control target key end

     0   :  { %9 = vsyncpa [#allocation5], 0  ;;  %s270_s0 = inlined_call_operand.hbm [shape: f32[2], index: 0, kind: input, shape index: {}]   ;;  %s271_s1 = inlined_call_operand.hbm [shape: f32[16,128], index: 1, kind: input, shape index: {}]   ;;  %s272_s2 = inlined_call_operand.hbm [shape: f32[16,128], index: 2, kind: output, shape index: {0}]   ;;  %s273_s3 = inlined_call_operand.vmem [shape: f32[2,1], index: 3, kind: output, shape index: {1}]  }
   0x1   :  { %10 = vsyncpa [#allocation3], 0 }
   0x2   :  { %11 = vsyncpa [#allocation4], 0  ;;  %s216_s12 = smov [#allocation2]   ;;  %s217_s15 = smov [#allocation6]  }
   0x3   :  { %19 = dma.hbm_to_smem %s270_s0, 16, %s216_s12, [#allocation5]  }
   0x4   :  { %s25_s16 = sshll.u32 %s217_s15, 4  ;;  %s26_s16 = int_to_ptr.vmem [resolvable:$true] %s25_s16 }
   0x5   :  { %s178_s17 = scalar_lea.vmem %s26_s16, 256  ;;  %p183_p1 = scmp.lt.s32.totalorder %s26_s16, %s26_s16 }
   0x6   :  { %p179_p0 = scmp.ne.s32.totalorder %s26_s16, %s178_s17  ;;  %p184_p2 = scmp.lt.s32.totalorder %s178_s17, %s178_s17 }
   0x8   :  { %p185_p3 = por %p184_p2, %p183_p1 }
   0xa   :  { %p186_p4 = pnand %p185_p3, %p179_p0 }
   0xc   :  { %189 = shalt.err (!%p186_p4)
}
   0xd   :  { %s218_s18 = smov 128   ;;  %s219_s19 = smov 8  }
   0xe   :  { %31 = dma.hbm_to_vmem [thread:$0]  %s271_s1, 256, %s26_s16, [#allocation3], %s218_s18, %s218_s18, %s219_s19  }
   0xf   :  { %210 = dma.done.wait [#allocation5], 16  }
  0x10   :  { %211 = vsyncadd [#allocation5], 4294967280 }
  0x11   :  { %212 = dma.done.wait [#allocation3], 256  }
  0x12   :  { %213 = vsyncadd [#allocation3], 4294967040 }
  0x13   :  { %38 = sfence }
  0x14   :  { %v39_v0 = vld [vmem:[#allocation6] sm:$0xff]  ;;  %v40_v1 = vld [vmem:[#allocation6 + $0x8] sm:$0xff]  ;;  %s63_s0 = sld [smem:[#allocation2]]  ;;  %vm69_vm0 = vcmask 0  }
  0x15   :  { %v41_v2 = vmin.f32 %v39_v0, %v40_v1  ;;  %v52_v3 = vmax.f32 %v39_v0, %v40_v1  ;;  %s126_s1 = sld [smem:[#allocation2 + $0x1]] }
  0x17   :  { %42 = vmin.xlane.f32.xlu0 %v41_v2 }
  0x1a   :  { %v64_v18 = vstv %s63_s0 }
  0x1b   :  { %53 = vmax.xlane.f32.xlu0 %v52_v3  ;;  %v67_v21 = vstv %s126_s1 }
  0xa0   :  { %v43_v4 = vpop.xlane.xlu0 %42 }
  0xa1   :  { %v44_v5 = vrot.slane %v43_v4, 4 }
  0xa3   :  { %v45_v6 = vmin.f32 %v43_v4, %v44_v5 }
  0xa4   :  { %v54_v7 = vpop.xlane.xlu0 %53 }
  0xa5   :  { %v46_v8 = vrot.slane %v45_v6, 2  ;;  %v55_v9 = vrot.slane %v54_v7, 4 }
  0xa7   :  { %v56_v10 = vmax.f32 %v54_v7, %v55_v9  ;;  %v47_v11 = vmin.f32 %v45_v6, %v46_v8 }
  0xa9   :  { %v57_v12 = vrot.slane %v56_v10, 2  ;;  %v48_v13 = vrot.slane %v47_v11, 1 }
  0xab   :  { %v58_v14 = vmax.f32 %v56_v10, %v57_v12  ;;  %v49_v15 = vmin.f32 %v47_v11, %v48_v13 }
  0xad   :  { %127 = vpush %v49_v15  ;;  %v59_v16 = vrot.slane %v58_v14, 1 }
  0xaf   :  { %v60_v17 = vmax.f32 %v58_v14, %v59_v16 }
  0xb1   :  { %129 = vpush %v60_v17 }
  0xde   :  { %s128_s22 = spop %127 }
  0xdf   :  { %v51_v19 = vstv %s128_s22 }
  0xe0   :  { %v65_v20 = vmin.f32 %v51_v19, %v64_v18 }
  0xe2   :  { %70 = vst.msk [vmem:[%s273_s3] sm:$0x1] %vm69_vm0, %v65_v20  ;;  %s130_s25 = spop %129  ;;  %v72_v24 = vmin.f32 %v65_v20, 0.0 }
  0xe3   :  { %v62_v22 = vstv %s130_s25 }
  0xe4   :  { %v68_v23 = vmax.f32 %v62_v22, %v67_v21 }
  0xe6   :  { %71 = vst.msk [vmem:[%s273_s3 + $0x1] sm:$0x1] %vm69_vm0, %v68_v23  ;;  %v73_v25 = vmax.f32 %v68_v23, 0.0  ;;  %s220_s3 = smov [#allocation7]  }
  0xe7   :  { %s109_s28 = sshll.u32 %s220_s3, 4  ;;  %s110_s28 = int_to_ptr.vmem [resolvable:$true] %s109_s28 }
  0xe8   :  { %v75_v26 = vsub.f32 %v73_v25, %v72_v24  ;;  %vm256_vm1 = vcmp.eq.f32.partialorder %v73_v25, %v72_v24  ;;  %s190_s29 = scalar_lea.vmem %s110_s28, 256  ;;  %p195_p6 = scmp.lt.s32.totalorder %s110_s28, %s110_s28 }
  0xe9   :  { %p191_p5 = scmp.ne.s32.totalorder %s110_s28, %s190_s29  ;;  %p196_p7 = scmp.lt.s32.totalorder %s190_s29, %s190_s29 }
  0xea   :  { %v77_v27 = vmul.f32 0.003921569, %v75_v26 }
  0xeb   :  { %p197_p8 = por %p196_p7, %p195_p6 }
  0xec   :  { %v78_v28 = vmax.f32 %v77_v27, 1.1920929e-07 }
  0xed   :  { %p198_p9 = pnand %p197_p8, %p191_p5 }
  0xee   :  { %v79_v30 = vsel %vm256_vm1, 1.0, %v78_v28 }
  0xef   :  { %160 = vrcp.f32 %v79_v30 }
  0xfc   :  { %v161_v31 = vpop.eup %160 }
  0xfd   :  { %v81_v32 = vmul.f32 %v161_v31, %v72_v24  ;;  %v88_v43 = vmul.f32 %v161_v31, %v39_v0  ;;  %v89_v44 = vmul.f32 %v161_v31, %v40_v1 }
  0xff   :  { %v133_v33 = vcvt.f32.s32 %v81_v32  ;;  %v131_v35 = vand.u32 2147483647, %v81_v32  ;;  %v136_v37 = vand.u32 2147483648, %v81_v32 }
 0x101   :  { %v134_v34 = vcvt.s32.f32 %v133_v33  ;;  %vm132_vm2 = vcmp.lt.f32.partialorder %v131_v35, 8388608.0 }
 0x103   :  { %v135_v36 = vand.u32 2147483647, %v134_v34 }
 0x105   :  { %v137_v38 = vor.u32 %v136_v37, %v135_v36 }
 0x107   :  { %v138_v39 = vsel %vm132_vm2, %v137_v38, %v81_v32 }
 0x108   :  { %v83_v40 = vsub.f32 0.0, %v138_v39 }
 0x10a   :  { %v84_v41 = vmax.f32 %v83_v40, 0.0 }
 0x10c   :  { %v85_v42 = vmin.f32 %v84_v41, 255.0 }
 0x10e   :  { %v86_v45 = vsel %vm256_vm1, 0.0, %v85_v42 }
 0x10f   :  { %v90_v46 = vadd.f32 %v88_v43, %v86_v45  ;;  %v91_v47 = vadd.f32 %v89_v44, %v86_v45 }
 0x111   :  { %v141_v48 = vcvt.f32.s32 %v90_v46  ;;  %v149_v49 = vcvt.f32.s32 %v91_v47  ;;  %v139_v51 = vand.u32 2147483647, %v90_v46  ;;  %v144_v54 = vand.u32 2147483648, %v90_v46 }
 0x112   :  { %v147_v55 = vand.u32 2147483647, %v91_v47  ;;  %v152_v57 = vand.u32 2147483648, %v91_v47 }
 0x113   :  { %v142_v50 = vcvt.s32.f32 %v141_v48  ;;  %v150_v52 = vcvt.s32.f32 %v149_v49  ;;  %vm140_vm3 = vcmp.lt.f32.partialorder %v139_v51, 8388608.0 }
 0x114   :  { %vm148_vm4 = vcmp.lt.f32.partialorder %v147_v55, 8388608.0 }
 0x115   :  { %v143_v53 = vand.u32 2147483647, %v142_v50  ;;  %v151_v56 = vand.u32 2147483647, %v150_v52 }
 0x117   :  { %v145_v58 = vor.u32 %v144_v54, %v143_v53  ;;  %v153_v59 = vor.u32 %v152_v57, %v151_v56 }
 0x119   :  { %v146_v60 = vsel %vm140_vm3, %v145_v58, %v90_v46  ;;  %v154_v61 = vsel %vm148_vm4, %v153_v59, %v91_v47 }
 0x11a   :  { %v94_v62 = vmax.f32 %v146_v60, 0.0  ;;  %v95_v63 = vmax.f32 %v154_v61, 0.0 }
 0x11c   :  { %v96_v0 = vmin.f32 %v94_v62, 255.0  ;;  %v97_v1 = vmin.f32 %v95_v63, 255.0 }
 0x11e   :  { %v98_v2 = vsub.f32 %v96_v0, %v86_v45  ;;  %v99_v3 = vsub.f32 %v97_v1, %v86_v45 }
 0x120   :  { %v100_v4 = vmul.f32 %v98_v2, %v79_v30  ;;  %v101_v5 = vmul.f32 %v99_v3, %v79_v30 }
 0x122   :  { %102 = vst [vmem:[#allocation7] sm:$0xff] %v100_v4  ;;  %103 = vst [vmem:[#allocation7 + $0x8] sm:$0xff] %v101_v5 }
 0x123   :  { %201 = shalt.err (!%p198_p9)
}
 0x124   :  { %115 = dma.vmem_to_hbm [thread:$0]  %s110_s28, 256, %s272_s2, [#allocation4], %s218_s18, %s218_s18, %s219_s19  }
 0x125   :  { %214 = dma.done.wait [#allocation4], 256  }
 0x126   :  { %215 = vsyncadd [#allocation4], 4294967040 }
 0x127   :  { %123 = vsyncpa [#allocation3], 1 }
 0x128   :  { %124 = vsyncpa [#allocation4], 1 }
 0x129   :  { %125 = vsyncpa [#allocation5], 1 }

</bundles_post_ra>
